<compile_context>
chip_gen: v7x
topology: tpu7x:2x2x1
jax: 0.10.0
libtpu: 0.0.40
codegen_flags: <defaults>
</compile_context>

<pallas_src>
import jax
import jax.numpy as jnp
from jax.experimental import pallas as pl
from jax.experimental.pallas import tpu as pltpu


def _conv1x1_nchw_kernel(w_ref, b_ref, x_ref, o_ref):
    # w_ref: (Cout, Cin)   b_ref: (Cout, 1)
    # x_ref: (Cin, t_hw)   o_ref: (Cout, t_hw)
    acc = jnp.dot(w_ref[...], x_ref[...], preferred_element_type=jnp.float32)
    o_ref[...] = (acc + b_ref[...]).astype(o_ref.dtype)


def _pick_hw_tile(hw, max_tile=2048):
    # Whole spatial plane if it is small enough (single grid step per image);
    # otherwise a large, lane-aligned tile.
    if hw <= max_tile:
        return hw
    return max_tile  # multiple of 128; last partial tile is masked by Pallas


@jax.jit
def segmentation_layer_forward(feat_map_nchw, weight_oihw, bias):
    """1x1 Conv2d (nn.Conv2d(32, snumclass, kernel_size=1)) as a Pallas matmul.

    feat_map_nchw : (N, Cin, H, W)  float32
    weight_oihw   : (Cout, Cin, 1, 1)
    bias          : (Cout,)
    returns       : (N, Cout, H, W)
    """
    n, cin, h, w = feat_map_nchw.shape
    cout = weight_oihw.shape[0]
    hw = h * w
    t_hw = _pick_hw_tile(hw)

    # Metadata-only reshapes (no transposes, no extra HBM traffic).
    x_3d = feat_map_nchw.reshape(n, cin, hw)        # (N, Cin, HW)
    w_2d = weight_oihw.reshape(cout, cin)           # (Cout, Cin)
    b_2d = bias.reshape(cout, 1)                    # (Cout, 1)

    grid = (n, pl.cdiv(hw, t_hw))

    out_3d = pl.pallas_call(
        _conv1x1_nchw_kernel,
        out_shape=jax.ShapeDtypeStruct((n, cout, hw), feat_map_nchw.dtype),
        grid_spec=pltpu.PrefetchScalarGridSpec(
            num_scalar_prefetch=0,
            grid=grid,
            in_specs=[
                # Full weight / bias resident every step.
                pl.BlockSpec((cout, cin), lambda i, j: (0, 0)),
                pl.BlockSpec((cout, 1), lambda i, j: (0, 0)),
                # Per-image pixel tile; batch dim squeezed out of the kernel.
                pl.BlockSpec((None, cin, t_hw), lambda i, j: (i, 0, j)),
            ],
            out_specs=pl.BlockSpec((None, cout, t_hw), lambda i, j: (i, 0, j)),
        ),
        compiler_params=pltpu.CompilerParams(
            dimension_semantics=("parallel", "parallel"),
        ),
    )(w_2d, b_2d, x_3d)

    # (N, Cout, HW) -> (N, Cout, H, W): metadata-only reshape.
    return out_3d.reshape(n, cout, h, w)


if __name__ == "__main__":
    # Shapes implied by the module: Cin = 32 (fixed), Cout = args.snumclass.
    N, CIN, H, W = 2, 32, 16, 16
    SNUMCLASS = 8

    key = jax.random.PRNGKey(0)
    k_x, k_w, k_b = jax.random.split(key, 3)

    feat_map = jax.random.normal(k_x, (N, CIN, H, W), dtype=jnp.float32)
    # Deterministic synthetic parameters (same shapes as nn.Conv2d(32, snumclass, 1)).
    weight = jax.random.normal(k_w, (SNUMCLASS, CIN, 1, 1), dtype=jnp.float32) * 0.05
    bias = jax.random.normal(k_b, (SNUMCLASS,), dtype=jnp.float32) * 0.05

    out = segmentation_layer_forward(feat_map, weight, bias)
    out = jax.block_until_ready(out)

    # Sanity check against a plain-JAX reference of the 1x1 conv.
    ref = (
        jnp.einsum("nchw,oc->nohw", feat_map, weight.reshape(SNUMCLASS, CIN))
        + bias[None, :, None, None]
    )
    assert out.shape == (N, SNUMCLASS, H, W)
    assert jnp.allclose(out, ref, atol=1e-5, rtol=1e-5)

    print("KERNEL_OK")
</pallas_src>

<mosaic_0001>
module attributes {stable_mosaic.version = 11 : i64} {
  func.func @_conv1x1_nchw_kernel(%arg0: i32, %arg1: i32, %arg2: memref<8x32xf32, #tpu.memory_space<vmem>>, %arg3: memref<8x1xf32, #tpu.memory_space<vmem>>, %arg4: memref<1x32x256xf32, #tpu.memory_space<vmem>>, %arg5: memref<1x8x256xf32, #tpu.memory_space<vmem>>) attributes {dimension_semantics = [#tpu.dimension_semantics<parallel>, #tpu.dimension_semantics<parallel>], iteration_bounds = array<i64: 2, 1>, scalar_prefetch = 0 : i64, scratch_operands = 0 : i64, tpu.core_type = #tpu.core_type<tc>, window_params = [{pipeline_mode = #tpu.pipeline_mode<synchronous>, transform_indices = @transform_0, window_bounds = array<i64: 8, 32>}, {pipeline_mode = #tpu.pipeline_mode<synchronous>, transform_indices = @transform_1, window_bounds = array<i64: 8, 1>}, {transform_indices = @transform_2, window_bounds = array<i64: 1, 32, 256>}, {transform_indices = @transform_3, window_bounds = array<i64: 1, 8, 256>}]} {
    %c0 = arith.constant 0 : index
    %c0_0 = arith.constant 0 : index
    %0 = vector.load %arg2[%c0, %c0_0] : memref<8x32xf32, #tpu.memory_space<vmem>>, vector<8x32xf32>
    %c0_1 = arith.constant 0 : index
    %c0_2 = arith.constant 0 : index
    %c0_3 = arith.constant 0 : index
    %1 = vector.load %arg4[%c0_1, %c0_2, %c0_3] : memref<1x32x256xf32, #tpu.memory_space<vmem>>, vector<1x32x256xf32>
    %2 = vector.shape_cast %1 : vector<1x32x256xf32> to vector<32x256xf32>
    %cst = arith.constant dense<0.000000e+00> : vector<8x256xf32>
    %3 = tpu.matmul %0, %2, %cst {dimension_numbers = #tpu.dot_dimension_numbers<[1], [0], [0], [1], [0, 0, 1, 1], [], []>} : vector<8x32xf32>, vector<32x256xf32>, vector<8x256xf32> -> vector<8x256xf32>
    %c0_4 = arith.constant 0 : index
    %c0_5 = arith.constant 0 : index
    %4 = vector.load %arg3[%c0_4, %c0_5] : memref<8x1xf32, #tpu.memory_space<vmem>>, vector<8x1xf32>
    %5 = vector.broadcast %4 : vector<8x1xf32> to vector<8x256xf32>
    %6 = arith.addf %3, %5 : vector<8x256xf32>
    %c0_6 = arith.constant 0 : index
    %c0_7 = arith.constant 0 : index
    %c0_8 = arith.constant 0 : index
    %7 = vector.load %arg5[%c0_6, %c0_7, %c0_8] : memref<1x8x256xf32, #tpu.memory_space<vmem>>, vector<1x8x256xf32>
    %8 = vector.shape_cast %7 : vector<1x8x256xf32> to vector<8x256xf32>
    %9 = vector.shape_cast %6 : vector<8x256xf32> to vector<1x8x256xf32>
    tpu.vector_store %arg5[%c0_6, %c0_7, %c0_8], %9 {strides = array<i32>} : memref<1x8x256xf32, #tpu.memory_space<vmem>>, vector<1x8x256xf32>,
    return
  }
  func.func @transform_0(%arg0: i32, %arg1: i32) -> (i32, i32) {
    %c0_i32 = arith.constant 0 : i32
    %c0_i32_0 = arith.constant 0 : i32
    %c0_i32_1 = arith.constant 0 : i32
    return %c0_i32, %c0_i32_0 : i32, i32
  }
  func.func @transform_1(%arg0: i32, %arg1: i32) -> (i32, i32) {
    %c0_i32 = arith.constant 0 : i32
    %c0_i32_0 = arith.constant 0 : i32
    %c0_i32_1 = arith.constant 0 : i32
    return %c0_i32, %c0_i32_0 : i32, i32
  }
  func.func @transform_2(%arg0: i32, %arg1: i32) -> (i32, i32, i32) {
    %c0_i32 = arith.constant 0 : i32
    %c0_i32_0 = arith.constant 0 : i32
    return %arg0, %c0_i32, %arg1 : i32, i32, i32
  }
  func.func @transform_3(%arg0: i32, %arg1: i32) -> (i32, i32, i32) {
    %c0_i32 = arith.constant 0 : i32
    %c0_i32_0 = arith.constant 0 : i32
    return %arg0, %c0_i32, %arg1 : i32, i32, i32
  }
}

</mosaic_0001>

<bundles_post_ra>
// kernel: segmentation_layer_forward.1
= control target key start
LH: loop header
LB: loop body
LE: loop exit
PB: predicated region body
PF: predicated region fallthrough
CT: control target
= control target key end

     0   :  { %s484_s12 = smov 0   ;;  %s486_s13 = smov 0   ;;  %s523_s0 = inlined_call_operand.vmem [shape: f32[8,32], index: 0, kind: input, shape index: {}]   ;;  %s524_s1 = inlined_call_operand.vmem [shape: f32[8,1], index: 1, kind: input, shape index: {}]   ;;  %s525_s2 = inlined_call_operand.vmem [shape: f32[2,32,256], index: 2, kind: input, shape index: {}]   ;;  %s526_s3 = inlined_call_operand.vmem [shape: f32[2,8,256], index: 3, kind: output, shape index: {}]  }
   0x1   :  { %s488_s14 = smov 0  }
   0x2 LB: > { %s25_s15 = sadd.s32 1, %s456_s13  ;;  %p393_p0 = scmp.ge.s32.totalorder %s460_s14, 1  ;;  %s460_s14 = sphi %s488_s14, %s13_s14   ;;  %s456_s13 = sphi %s486_s13, %s528_s13   ;;  %s452_s12 = sphi %s484_s12, %s527_s12  }
   0x3   : > { %p27_p1 = scmp.ge.s32.totalorder %s25_s15, 2  ;;  %p158_p2 = scmp.lt.s32.totalorder %s460_s14, 3 }
   0x5   : > { %s530_s15 = smov (%p27_p1, %s25_s15), 0  ;;  %p159_p3 = pnand %p393_p0, %p158_p2 }
   0x6   : > { %p191_p4 = scmp.lt.s32.totalorder (!%p159_p3), %s452_s12, 1  ;;  %v219_v0 = vld [vmem:[%s524_s1] sm:$0xff] (!%p159_p3)  ;;  %v462_v1 = vmov (!%p159_p3), 0.0   ;;  %v463_v2 = vmov (!%p159_p3), 0   ;;  %vm225_vm0 = vcmask (!%p159_p3), 261120  }
   0x7   : > { %162 = sbr.rel (%p159_p3) target bundleno = 244 (0xf4), region = 32  ;;  %293 = vmatprep.mubr.f32.mxu0 (!%p159_p3), %v462_v1  ;;  %437 = vset.pattern.permute.xlu0 (!%p159_p3), %v463_v2  ;;  %v210_v15 = vld [vmem:[%s523_s0] sm:$0xff] (!%p159_p3) }
   0x8   : > { %222 = vperm.xlu0 (!%p159_p3), %437, %v219_v0  }
   0xe   : > { %s532_s12 = smov (!%p191_p4, %s452_s12), 1 }
   0xf   : > { %s401_s18 = sshll.u32 %s532_s12, 6  ;;  %s402_s24 = sshll.u32 %s532_s12, 4 }
  0x10   : > { %s198_s21 = scalar_lea.vmem %s525_s2, %s401_s18  ;;  %s208_s27 = scalar_lea.vmem %s526_s3, %s402_s24 }
  0x11   : > { %v212_v3 = vld [vmem:[%s198_s21 + $0x8] sm:$0xff]  ;;  %v214_v4 = vld [vmem:[%s198_s21 + $0x18] sm:$0xff]  ;;  %v211_v5 = vld [vmem:[%s198_s21] sm:$0xff] }
  0x12   : > { %v403_v6 = vpack.c.bf16 %v214_v4, %v212_v3  ;;  %v213_v7 = vld [vmem:[%s198_s21 + $0x10] sm:$0xff]  ;;  %v216_v8 = vld [vmem:[%s198_s21 + $0x28] sm:$0xff]  ;;  %v218_v9 = vld [vmem:[%s198_s21 + $0x38] sm:$0xff] }
  0x13   : > { %v405_v10 = vpack.c.bf16 %v213_v7, %v211_v5  ;;  %v407_v11 = vpack.c.bf16 %v218_v9, %v216_v8  ;;  %v215_v12 = vld [vmem:[%s198_s21 + $0x20] sm:$0xff]  ;;  %v217_v13 = vld [vmem:[%s198_s21 + $0x30] sm:$0xff] }
  0x14   : > { %404 = vmatprep.subr.bf16.mxu0 %v403_v6  ;;  %v409_v14 = vpack.c.bf16 %v217_v13, %v215_v12 }
  0x15   : > { %406 = vmatpush1.bf16.msra.mxu0 %v405_v10 }
  0x16   : > { %408 = vmatprep.subr.bf16.mxu0 %v407_v11 }
  0x19   : > { %410 = vmatpush1.bf16.msra.mxu0 %v409_v14 }
  0x1c   : > { %398 = vmatmul.mubr.msk.f32.vlgmr.msra.gmra.mrb[0].mxu0 %vm225_vm0, %v210_v15 }
  0x87   : > { %v223_v16 = vpop.permute.xlu0 %222 }
  0xef   : > { %v295_v17 = vpop.f32.mrb[0].mxu0 }
  0xf0   : > { %v296_v18 = vadd.f32 %v295_v17, %v223_v16  ;;  %v297_v19 = vpop.f32.mrb[1].mxu0 }
  0xf1   : > { %v298_v20 = vadd.f32 %v297_v19, %v223_v16 }
  0xf2   : > { %300 = vst [vmem:[%s208_s27] sm:$0xff] %v296_v18 }
  0xf3   : > { %301 = vst [vmem:[%s208_s27 + $0x8] sm:$0xff] %v298_v20 }
  0xf4 PF: > { %s13_s14 = sadd.s32 1, %s460_s14   ;;  %s527_s12 = smov %s456_s13 }
  0xf5   : > { %p10_p5 = scmp.ge.s32.totalorder %s13_s14, 4   ;;  %s528_s13 = smov %s530_s15 }
  0xf7   :  { %12 = sbr.rel (!%p10_p5) target bundleno = 2 (0x2), region = 62 }

</bundles_post_ra>
